<compile_context>
chip_gen: v7x
topology: tpu7x:2x2x1
jax: 0.10.0
libtpu: 0.0.40
codegen_flags: <defaults>
</compile_context>

<pallas_src>
import functools
import math

import jax
import jax.numpy as jnp
from jax import lax
from jax.experimental import pallas as pl
from jax.experimental.pallas import tpu as pltpu

_INV_SQRT2 = 0.7071067811865476
_SQRT_2_OVER_PI = 0.7978845608028654


def _mlp_kernel(x_ref, w1_ref, b1_ref, w2_ref, b2_ref, o_ref, acc_ref, *,
                approximate_gelu: bool):
    j = pl.program_id(1)

    @pl.when(j == 0)
    def _init():
        # Fold the fc2 bias into the accumulator init (b2 is resident anyway):
        # removes one (tile_m, out_f) add + acc re-read at finalize.
        acc_ref[...] = jnp.broadcast_to(b2_ref[...].astype(jnp.float32),
                                        acc_ref.shape)

    # fc1 chunk: native-dtype operands straight to the MXU, f32 accumulation.
    h = jnp.dot(x_ref[...], w1_ref[...], preferred_element_type=jnp.float32)
    h = h + b1_ref[...].astype(jnp.float32)

    # GELU in f32 (v5e has no bf16 VPU/EUP path; free on v6e/v7x).
    if approximate_gelu:
        # tanh approximation -> EUP slot (frees VALU on v5e). Slightly different
        # numerics vs torch.nn.GELU() default.
        h = 0.5 * h * (1.0 + jnp.tanh(_SQRT_2_OVER_PI * (h + 0.044715 * h * h * h)))
    else:
        # exact erf-based GELU == torch.nn.GELU() default.
        h = 0.5 * h * (1.0 + lax.erf(h * _INV_SQRT2))

    # dropout(p=0.0) is the identity in train and eval -> no-op.
    # TODO(synk): stochastic dropout for p>0 would use pltpu.prng_seed/prng_random_bits.

    # fc2 partial product for this hidden chunk; cast activations back to the weight
    # dtype so bf16 weights get bf16 MXU operands, accumulate in f32.
    acc_ref[...] += jnp.dot(h.astype(w2_ref.dtype), w2_ref[...],
                            preferred_element_type=jnp.float32)

    @pl.when(j == pl.num_programs(1) - 1)
    def _finalize():
        o_ref[...] = acc_ref[...].astype(o_ref.dtype)


def _nbytes(shape, dtype):
    return math.prod(shape) * jnp.dtype(dtype).itemsize


def _device_vmem_capacity_bytes():
    try:
        return int(pltpu.get_tpu_info().vmem_capacity_bytes)
    except Exception:
        return 64 << 20  # conservative: smallest across v5e/v6e/v7x


def mlp_pallas(x, w1, b1, w2, b2, *, tile_m=1024, tile_h=512,
               approximate_gelu=False):
    """x: [M, in_f]; w1: [in_f, hidden]; b1: [hidden]; w2: [hidden, out_f]; b2: [out_f].

    tile_m is the arithmetic-intensity knob: weights are re-streamed from HBM once per
    M-tile, so the streaming loop's AI ~= tile_m FLOP/byte. 768-1024 keeps v6e
    MXU-bound; v5e/v7x are compute-bound already at ~256-512. Tiles auto-shrink to the
    device's actual VMEM capacity (64 MiB/TC on v7x).
    """
    M, in_f = x.shape
    hidden = w1.shape[1]
    out_f = w2.shape[1]

    # ---- row tile: MXU-native 128-multiples (or full extent) ----------------------
    tile_m = min(tile_m, M)
    if tile_m < M:
        tile_m = min(max(128, (tile_m // 128) * 128), M)

    # Megacore occupancy (v7x has 2 TCs): if everything fits in one M-tile but M is
    # large enough that two >=768-row tiles remain comfortably compute-bound, split so
    # the "parallel" axis can shard rows across cores.
    if tile_m >= M and M >= 1536:
        tile_m = ((pl.cdiv(M, 2) + 127) // 128) * 128

    # ---- hidden chunk: exact divisor of hidden (or full extent) -------------------
    # Guarantees hidden % tile_h == 0, so no padded/garbage tail chunk is ever
    # accumulated into acc (correctness), and no grid step is wasted on padding.
    tile_h = min(tile_h, hidden)
    if tile_h < hidden:
        cand = (tile_h // 128) * 128
        while cand >= 128 and hidden % cand != 0:
            cand -= 128
        tile_h = cand if cand >= 128 else hidden
    assert hidden % tile_h == 0

    # ---- VMEM footprint / auto-shrink to the real device capacity -----------------
    def _footprint(tm, th):
        return (
            2 * _nbytes((tm, in_f), x.dtype)      # x row tile (double-buffered)
            + 2 * _nbytes((in_f, th), w1.dtype)   # W1 hidden-chunk
            + 2 * _nbytes((1, th), b1.dtype)      # b1 chunk
            + 2 * _nbytes((th, out_f), w2.dtype)  # W2 hidden-chunk
            + 2 * _nbytes((1, out_f), b2.dtype)   # b2
            + 2 * _nbytes((tm, out_f), x.dtype)   # output tile
            + _nbytes((tm, out_f), jnp.float32)   # f32 accumulator scratch
        )

    vmem_cap = _device_vmem_capacity_bytes()
    budget = int(vmem_cap * 0.8)

    # Shrink tile_m first (biggest footprint term), keeping 128-alignment and >=256
    # so the weight-stream AI stays above every chip's compute-bound threshold.
    while _footprint(tile_m, tile_h) > budget and tile_m > 256:
        tile_m = max(256, ((tile_m - 128) // 128) * 128)
    # Then shrink tile_h to a smaller exact divisor of hidden if still over budget.
    while _footprint(tile_m, tile_h) > budget and tile_h > 256:
        nxt = tile_h - 128
        while nxt >= 256 and hidden % nxt != 0:
            nxt -= 128
        if nxt < 256:
            break
        tile_h = nxt

    buf_bytes = _footprint(tile_m, tile_h)
    # Never request more than physical VMEM (v7x: 64 MiB per TensorCore).
    vmem_limit = min(max(int(buf_bytes) + (8 << 20), 32 << 20), vmem_cap)

    b1r = b1.reshape(1, hidden)
    b2r = b2.reshape(1, out_f)

    m_tiles = pl.cdiv(M, tile_m)
    grid = (m_tiles, hidden // tile_h)

    # Advisory cost: weights (and biases) are re-streamed once per M-tile.
    cost = pl.CostEstimate(
        flops=2 * M * (in_f * hidden + hidden * out_f),
        transcendentals=M * hidden,  # one erf/tanh per hidden activation
        bytes_accessed=(
            _nbytes((M, in_f), x.dtype)
            + m_tiles * (_nbytes((in_f, hidden), w1.dtype)
                         + _nbytes((hidden,), b1.dtype)
                         + _nbytes((hidden, out_f), w2.dtype)
                         + _nbytes((out_f,), b2.dtype))
            + _nbytes((M, out_f), x.dtype)
        ),
    )

    kernel = functools.partial(_mlp_kernel, approximate_gelu=approximate_gelu)

    return pl.pallas_call(
        kernel,
        out_shape=jax.ShapeDtypeStruct((M, out_f), x.dtype),
        grid_spec=pltpu.PrefetchScalarGridSpec(
            num_scalar_prefetch=0,
            grid=grid,
            in_specs=[
                pl.BlockSpec((tile_m, in_f), lambda i, j: (i, 0)),    # x tile (resident over j)
                pl.BlockSpec((in_f, tile_h), lambda i, j: (0, j)),    # W1 hidden chunk
                pl.BlockSpec((1, tile_h), lambda i, j: (0, j)),       # b1 chunk
                pl.BlockSpec((tile_h, out_f), lambda i, j: (j, 0)),   # W2 hidden chunk
                pl.BlockSpec((1, out_f), lambda i, j: (0, 0)),        # b2 (grid-invariant)
            ],
            out_specs=pl.BlockSpec((tile_m, out_f), lambda i, j: (i, 0)),
            scratch_shapes=[pltpu.VMEM((tile_m, out_f), jnp.float32)],
        ),
        compiler_params=pltpu.CompilerParams(
            dimension_semantics=("parallel", "arbitrary"),
            vmem_limit_bytes=vmem_limit,
        ),
        cost_estimate=cost,
    )(x, w1, b1r, w2, b2r)


def mlp_reference(x, w1, b1, w2, b2):
    xf = x.astype(jnp.float32)
    h = xf @ w1.astype(jnp.float32) + b1.astype(jnp.float32)
    h = jax.nn.gelu(h, approximate=False)
    return (h @ w2.astype(jnp.float32) + b2.astype(jnp.float32)).astype(x.dtype)


def _uniform_init(key, shape, fan_in, dtype):
    bound = 1.0 / math.sqrt(fan_in)
    return jax.random.uniform(key, shape, jnp.float32, -bound, bound).astype(dtype)


if __name__ == "__main__":
    key = jax.random.PRNGKey(0)
    kx, k1, k2, k3, k4, kx2 = jax.random.split(key, 6)

    # ---- f32 demo at the module's small shapes (exact-parity check) ----
    batch, seq = 2, 8
    in_feature, hidden_feature, out_feature = 16, 32, 16

    x = jax.random.normal(kx, (batch, seq, in_feature), dtype=jnp.float32)
    w1 = _uniform_init(k1, (in_feature, hidden_feature), in_feature, jnp.float32)
    b1 = _uniform_init(k2, (hidden_feature,), in_feature, jnp.float32)
    w2 = _uniform_init(k3, (hidden_feature, out_feature), hidden_feature, jnp.float32)
    b2 = _uniform_init(k4, (out_feature,), hidden_feature, jnp.float32)

    x2d = x.reshape(batch * seq, in_feature)  # Linear acts on the last dim only
    out = mlp_pallas(x2d, w1, b1, w2, b2).reshape(batch, seq, out_feature)
    jax.block_until_ready(out)

    ref = mlp_reference(x2d, w1, b1, w2, b2).reshape(batch, seq, out_feature)
    assert jnp.allclose(out, ref, atol=1e-5, rtol=1e-5), "f32 mismatch vs reference"

    # ---- bf16 demo: bf16 MXU operands, f32 accumulation, multi-tile accumulator path ----
    Mb, in_b, hid_b, out_b = 256, 128, 256, 128
    xb = jax.random.normal(kx2, (Mb, in_b), dtype=jnp.float32).astype(jnp.bfloat16)
    w1b = _uniform_init(k1, (in_b, hid_b), in_b, jnp.bfloat16)
    b1b = _uniform_init(k2, (hid_b,), in_b, jnp.bfloat16)
    w2b = _uniform_init(k3, (hid_b, out_b), hid_b, jnp.bfloat16)
    b2b = _uniform_init(k4, (out_b,), hid_b, jnp.bfloat16)

    outb = mlp_pallas(xb, w1b, b1b, w2b, b2b, tile_m=128, tile_h=128)  # grid (2, 2)
    jax.block_until_ready(outb)
    refb = mlp_reference(xb, w1b, b1b, w2b, b2b)
    assert jnp.allclose(outb.astype(jnp.float32), refb.astype(jnp.float32),
                        atol=1e-1, rtol=1e-1), "bf16 mismatch vs reference"

    print("KERNEL_OK")
</pallas_src>

<mosaic_0001>
module attributes {stable_mosaic.version = 11 : i64} {
  func.func @_mlp_kernel(%arg0: i32, %arg1: i32, %arg2: memref<16x16xf32, #tpu.memory_space<vmem>>, %arg3: memref<16x32xf32, #tpu.memory_space<vmem>>, %arg4: memref<1x32xf32, #tpu.memory_space<vmem>>, %arg5: memref<32x16xf32, #tpu.memory_space<vmem>>, %arg6: memref<1x16xf32, #tpu.memory_space<vmem>>, %arg7: memref<16x16xf32, #tpu.memory_space<vmem>>, %arg8: memref<16x16xf32, #tpu.memory_space<vmem>>) attributes {dimension_semantics = [#tpu.dimension_semantics<parallel>, #tpu.dimension_semantics<arbitrary>], iteration_bounds = array<i64: 1, 1>, scalar_prefetch = 0 : i64, scratch_operands = 1 : i64, tpu.core_type = #tpu.core_type<tc>, window_params = [{transform_indices = @transform_0, window_bounds = array<i64: 16, 16>}, {transform_indices = @transform_1, window_bounds = array<i64: 16, 32>}, {transform_indices = @transform_2, window_bounds = array<i64: 1, 32>}, {transform_indices = @transform_3, window_bounds = array<i64: 32, 16>}, {pipeline_mode = #tpu.pipeline_mode<synchronous>, transform_indices = @transform_4, window_bounds = array<i64: 1, 16>}, {transform_indices = @transform_5, window_bounds = array<i64: 16, 16>}]} {
    %c0_i32 = arith.constant 0 : i32
    %0 = arith.cmpi eq, %arg1, %c0_i32 : i32
    %1 = arith.extui %0 : i1 to i32
    %c0_i32_0 = arith.constant 0 : i32
    %2 = arith.cmpi ne, %1, %c0_i32_0 : i32
    scf.if %2 {
      %c0_18 = arith.constant 0 : index
      %c0_19 = arith.constant 0 : index
      %25 = vector.load %arg6[%c0_18, %c0_19] : memref<1x16xf32, #tpu.memory_space<vmem>>, vector<1x16xf32>
      %26 = vector.shape_cast %25 : vector<1x16xf32> to vector<1x16xf32>
      %27 = vector.broadcast %26 : vector<1x16xf32> to vector<16x16xf32>
      %c0_20 = arith.constant 0 : index
      %c0_21 = arith.constant 0 : index
      %28 = vector.load %arg8[%c0_20, %c0_21] : memref<16x16xf32, #tpu.memory_space<vmem>>, vector<16x16xf32>
      tpu.vector_store %arg8[%c0_20, %c0_21], %27 {strides = array<i32>} : memref<16x16xf32, #tpu.memory_space<vmem>>, vector<16x16xf32>,
    } else {
    }
    %c0 = arith.constant 0 : index
    %c0_1 = arith.constant 0 : index
    %3 = vector.load %arg2[%c0, %c0_1] : memref<16x16xf32, #tpu.memory_space<vmem>>, vector<16x16xf32>
    %c0_2 = arith.constant 0 : index
    %c0_3 = arith.constant 0 : index
    %4 = vector.load %arg3[%c0_2, %c0_3] : memref<16x32xf32, #tpu.memory_space<vmem>>, vector<16x32xf32>
    %cst = arith.constant dense<0.000000e+00> : vector<16x32xf32>
    %5 = tpu.matmul %3, %4, %cst {dimension_numbers = #tpu.dot_dimension_numbers<[1], [0], [0], [1], [0, 0, 1, 1], [], []>} : vector<16x16xf32>, vector<16x32xf32>, vector<16x32xf32> -> vector<16x32xf32>
    %c0_4 = arith.constant 0 : index
    %c0_5 = arith.constant 0 : index
    %6 = vector.load %arg4[%c0_4, %c0_5] : memref<1x32xf32, #tpu.memory_space<vmem>>, vector<1x32xf32>
    %7 = vector.broadcast %6 : vector<1x32xf32> to vector<16x32xf32>
    %8 = arith.addf %5, %7 : vector<16x32xf32>
    %cst_6 = arith.constant 5.000000e-01 : f32
    %9 = vector.broadcast %cst_6 : f32 to vector<16x32xf32>
    %10 = arith.mulf %9, %8 : vector<16x32xf32>
    %cst_7 = arith.constant 0.707106769 : f32
    %11 = vector.broadcast %cst_7 : f32 to vector<16x32xf32>
    %12 = arith.mulf %8, %11 : vector<16x32xf32>
    %13 = math.erf %12 : vector<16x32xf32>
    %cst_8 = arith.constant 1.000000e+00 : f32
    %14 = vector.broadcast %cst_8 : f32 to vector<16x32xf32>
    %15 = arith.addf %14, %13 : vector<16x32xf32>
    %16 = arith.mulf %10, %15 : vector<16x32xf32>
    %c0_9 = arith.constant 0 : index
    %c0_10 = arith.constant 0 : index
    %17 = vector.load %arg8[%c0_9, %c0_10] : memref<16x16xf32, #tpu.memory_space<vmem>>, vector<16x16xf32>
    %c0_11 = arith.constant 0 : index
    %c0_12 = arith.constant 0 : index
    %18 = vector.load %arg5[%c0_11, %c0_12] : memref<32x16xf32, #tpu.memory_space<vmem>>, vector<32x16xf32>
    %cst_13 = arith.constant dense<0.000000e+00> : vector<16x16xf32>
    %19 = tpu.matmul %16, %18, %cst_13 {dimension_numbers = #tpu.dot_dimension_numbers<[1], [0], [0], [1], [0, 0, 1, 1], [], []>} : vector<16x32xf32>, vector<32x16xf32>, vector<16x16xf32> -> vector<16x16xf32>
    %20 = arith.addf %17, %19 : vector<16x16xf32>
    %c0_14 = arith.constant 0 : index
    %c0_15 = arith.constant 0 : index
    %21 = vector.load %arg8[%c0_14, %c0_15] : memref<16x16xf32, #tpu.memory_space<vmem>>, vector<16x16xf32>
    tpu.vector_store %arg8[%c0_14, %c0_15], %20 {strides = array<i32>} : memref<16x16xf32, #tpu.memory_space<vmem>>, vector<16x16xf32>,
    %c0_i32_16 = arith.constant 0 : i32
    %22 = arith.cmpi eq, %arg1, %c0_i32_16 : i32
    %23 = arith.extui %22 : i1 to i32
    %c0_i32_17 = arith.constant 0 : i32
    %24 = arith.cmpi ne, %23, %c0_i32_17 : i32
    scf.if %24 {
      %c0_18 = arith.constant 0 : index
      %c0_19 = arith.constant 0 : index
      %25 = vector.load %arg8[%c0_18, %c0_19] : memref<16x16xf32, #tpu.memory_space<vmem>>, vector<16x16xf32>
      %c0_20 = arith.constant 0 : index
      %c0_21 = arith.constant 0 : index
      %26 = vector.load %arg7[%c0_20, %c0_21] : memref<16x16xf32, #tpu.memory_space<vmem>>, vector<16x16xf32>
      tpu.vector_store %arg7[%c0_20, %c0_21], %25 {strides = array<i32>} : memref<16x16xf32, #tpu.memory_space<vmem>>, vector<16x16xf32>,
    } else {
    }
    return
  }
  func.func @transform_0(%arg0: i32, %arg1: i32) -> (i32, i32) {
    %c0_i32 = arith.constant 0 : i32
    %c0_i32_0 = arith.constant 0 : i32
    return %arg0, %c0_i32 : i32, i32
  }
  func.func @transform_1(%arg0: i32, %arg1: i32) -> (i32, i32) {
    %c0_i32 = arith.constant 0 : i32
    %c0_i32_0 = arith.constant 0 : i32
    return %c0_i32, %arg1 : i32, i32
  }
  func.func @transform_2(%arg0: i32, %arg1: i32) -> (i32, i32) {
    %c0_i32 = arith.constant 0 : i32
    %c0_i32_0 = arith.constant 0 : i32
    return %c0_i32, %arg1 : i32, i32
  }
  func.func @transform_3(%arg0: i32, %arg1: i32) -> (i32, i32) {
    %c0_i32 = arith.constant 0 : i32
    %c0_i32_0 = arith.constant 0 : i32
    return %arg1, %c0_i32 : i32, i32
  }
  func.func @transform_4(%arg0: i32, %arg1: i32) -> (i32, i32) {
    %c0_i32 = arith.constant 0 : i32
    %c0_i32_0 = arith.constant 0 : i32
    %c0_i32_1 = arith.constant 0 : i32
    return %c0_i32, %c0_i32_0 : i32, i32
  }
  func.func @transform_5(%arg0: i32, %arg1: i32) -> (i32, i32) {
    %c0_i32 = arith.constant 0 : i32
    %c0_i32_0 = arith.constant 0 : i32
    return %arg0, %c0_i32 : i32, i32
  }
}

</mosaic_0001>

<bundles_post_ra>
// kernel: tpu_custom_call.1
= control target key start
LH: loop header
LB: loop body
LE: loop exit
PB: predicated region body
PF: predicated region fallthrough
CT: control target
= control target key end

     0   :  { %vm32_vm0 = vcmask 130048   ;;  %s413_s0 = inlined_call_operand.vmem [shape: f32[16,16], index: 0, kind: input, shape index: {}]   ;;  %s414_s1 = inlined_call_operand.vmem [shape: f32[16,32], index: 1, kind: input, shape index: {}]   ;;  %s415_s2 = inlined_call_operand.vmem [shape: f32[1,32], index: 2, kind: input, shape index: {}]   ;;  %s416_s3 = inlined_call_operand.vmem [shape: f32[32,16], index: 3, kind: input, shape index: {}]   ;;  %s417_s4 = inlined_call_operand.vmem [shape: f32[1,16], index: 4, kind: input, shape index: {}]   ;;  %s418_s5 = inlined_call_operand.hbm [shape: f32[16,16], index: 5, kind: output, shape index: {}]  }
   0x1   :  { %v37_v0 = vld [vmem:[%s414_s1] sm:$0xff]  ;;  %v38_v1 = vld [vmem:[%s414_s1 + $0x8] sm:$0xff] }
   0x2   :  { %v35_v2 = vld [vmem:[%s413_s0] sm:$0xff]  ;;  %v287_v3 = vpack.c.bf16 %v38_v1, %v37_v0 }
   0x3   :  { %273 = vmatprep.mubr.msk.f32.mxu0 %vm32_vm0, %v35_v2 }
   0x4   :  { %10 = vsyncpa [#allocation4], 0  ;;  %288 = vmatprep.subr.bf16.mxu0 %v287_v3  ;;  %v36_v4 = vld [vmem:[%s413_s0 + $0x8] sm:$0xff]  ;;  %v140_v5 = vld [vmem:[%s416_s3] sm:$0xff]  ;;  %vm144_vm1 = vcmask 261120  }
   0x5   :  { %290 = vmatpush3.bf16.msra.mxu0 %v287_v3  ;;  %v141_v6 = vld [vmem:[%s416_s3 + $0x8] sm:$0xff]  ;;  %v142_v8 = vld [vmem:[%s416_s3 + $0x10] sm:$0xff]  ;;  %v143_v9 = vld [vmem:[%s416_s3 + $0x18] sm:$0xff] }
   0x6   :  { %v291_v7 = vpack.c.bf16 %v141_v6, %v140_v5  ;;  %v295_v10 = vpack.c.bf16 %v143_v9, %v142_v8  ;;  %v253_v11 = vld [vmem:[%s417_s4] ss:$0 sm:$0xff] }
   0x7   :  { %34 = vst.msk [vmem:[#allocation2 + $0x8] sm:$0xff] %vm32_vm0, %v253_v11  ;;  %33 = vst.msk [vmem:[#allocation2] sm:$0xff] %vm32_vm0, %v253_v11  ;;  %v254_v12 = vld [vmem:[%s415_s2] ss:$0 sm:$0xff]  ;;  %s330_s2 = smov [#allocation3]  }
   0x8   :  { %274 = vmatmul.mubr.msk.f32.vlgmr.msra.gmra.mrb[0].mxu0 %vm32_vm0, %v36_v4  ;;  %292 = vmatprep.subr.bf16.mxu1 %v291_v7  ;;  %s242_s3 = sshll.u32 %s330_s2, 4  ;;  %s243_s3 = int_to_ptr.vmem [resolvable:$true] %s242_s3 }
   0x9   :  { %294 = vmatpush3.bf16.msra.mxu1 %v291_v7  ;;  %s306_s4 = scalar_lea.vmem %s243_s3, 256  ;;  %p311_p1 = scmp.lt.s32.totalorder %s243_s3, %s243_s3 }
   0xa   :  { %296 = vmatprep.subr.bf16.mxu1 %v295_v10  ;;  %p307_p0 = scmp.ne.s32.totalorder %s243_s3, %s306_s4  ;;  %p312_p2 = scmp.lt.s32.totalorder %s306_s4, %s306_s4 }
   0xc   :  { %p313_p3 = por %p312_p2, %p311_p1 }
   0xd   :  { %298 = vmatpush3.bf16.msra.mxu1 %v295_v10 }
   0xe   :  { %v139_v27 = vld [vmem:[#allocation2 + $0x8] sm:$0xff]  ;;  %v138_v28 = vld [vmem:[#allocation2] sm:$0xff]  ;;  %p314_p4 = pnand %p313_p3, %p307_p0 }
  0xdb   :  { %v275_v13 = vpop.f32.mrb[0].mxu0 }
  0xdc   :  { %v125_v14 = vadd.f32 %v275_v13, %v254_v12  ;;  %v119_v15 = vpop.f32.mrb[1].mxu0 }
  0xdd   :  { %v120_v16 = vadd.f32 %v254_v12, %v119_v15 }
  0xde   :  { %v131_v17 = vmul.f32 0.70710677, %v125_v14  ;;  %v129_v24 = vmul.f32 0.5, %v125_v14 }
  0xdf   :  { %v130_v18 = vmul.f32 0.70710677, %v120_v16  ;;  %v128_v22 = vmul.f32 0.5, %v120_v16 }
  0xe0   :  { %302 = verf.f32 %v131_v17 }
  0xe1   :  { %304 = verf.f32 %v130_v18 }
  0xea   :  { %v303_v19 = vpop.eup %302 }
  0xeb   :  { %v305_v20 = vpop.eup %304  ;;  %v135_v21 = vadd.f32 1.0, %v303_v19 }
  0xec   :  { %v134_v23 = vadd.f32 1.0, %v305_v20 }
  0xed   :  { %v137_v26 = vmul.f32 %v135_v21, %v129_v24 }
  0xee   :  { %v136_v25 = vmul.f32 %v134_v23, %v128_v22 }
  0xf0   :  { %284 = vmatprep.mubr.msk.f32.mxu1 %vm144_vm1, %v136_v25 }
  0xf1   :  { %285 = vmatmul.mubr.msk.f32.vlgmr.msra.gmra.mrb[0].mxu1 %vm144_vm1, %v137_v26 }
 0x1c4   :  { %v286_v29 = vpop.f32.mrb[0].mxu1 }
 0x1c5   :  { %v227_v30 = vadd.f32 %v286_v29, %v139_v27  ;;  %v217_v31 = vpop.f32.mrb[1].mxu1 }
 0x1c6   :  { %v226_v32 = vadd.f32 %v217_v31, %v138_v28 }
 0x1c7   :  { %229 = vst.msk [vmem:[#allocation2 + $0x8] sm:$0xff] %vm32_vm0, %v227_v30 }
 0x1c8   :  { %228 = vst.msk [vmem:[#allocation2] sm:$0xff] %vm32_vm0, %v226_v32 }
 0x1ce   :  { %v234_v33 = vld [vmem:[#allocation2 + $0x8] sm:$0xff] }
 0x1cf   :  { %v233_v34 = vld [vmem:[#allocation2] sm:$0xff]  ;;  %236 = vst.msk [vmem:[#allocation3 + $0x8] sm:$0xff] %vm32_vm0, %v234_v33 }
 0x1d0   :  { %235 = vst.msk [vmem:[#allocation3] sm:$0xff] %vm32_vm0, %v233_v34 }
 0x1d1   :  { %317 = shalt.err (!%p314_p4)
}
 0x1d2   :  { %s318_s13 = scalar_lea.hbm %s418_s5, 256 }
 0x1d3   :  { %p319_p5 = scmp.ne.s32.totalorder %s418_s5, %s318_s13  ;;  %p322_p6 = scmp.lt.u32.totalorder %s318_s13, %s418_s5 }
 0x1d5   :  { %p324_p7 = pnand %p322_p6, %p319_p5 }
 0x1d7   :  { %327 = shalt.err (!%p324_p7)
}
 0x1d8   :  { %s331_s18 = smov 128   ;;  %s332_s19 = smov 8  }
 0x1d9   :  { %248 = dma.vmem_to_hbm [thread:$0]  %s243_s3, 256, %s418_s5, [#allocation4], %s331_s18, %s331_s18, %s332_s19  }
 0x1da   :  { %328 = dma.done.wait [#allocation4], 256  }
 0x1db   :  { %329 = vsyncadd [#allocation4], 4294967040 }
 0x1dc   :  { %252 = vsyncpa [#allocation4], 1 }

</bundles_post_ra>
